<compile_context>
chip_gen: v5e
topology: v5e:2x2
jax: 0.10.0
libtpu: 0.0.40
codegen_flags: <defaults>
</compile_context>

<pallas_src>
import functools
import numpy as np
import jax
import jax.numpy as jnp
from jax.experimental import pallas as pl
from jax.experimental.pallas import tpu as pltpu


# --------------------------------------------------------------------------
# Fused CBAM kernel: one grid step == one image, everything stays in VMEM.
# --------------------------------------------------------------------------
def cbam_kernel(x_ref, w1t_ref, w2_ref, m_ref, res_ref):
    x = x_ref[0].astype(jnp.float32)                     # (C, HW) lane-dense
    w1t = w1t_ref[...].astype(jnp.float32)               # (C, Ch) conv1 weight (transposed)
    w2 = w2_ref[...].astype(jnp.float32)                 # (C, Ch) conv2 weight

    # ---- Channel attention: avg/max pool over HW (lane reduce) + shared MLP.
    avg_c = jnp.mean(x, axis=1, keepdims=True)           # (C, 1)
    max_c = jnp.max(x, axis=1, keepdims=True)            # (C, 1)

    def mlp(pooled):                                     # pooled: (C, 1)
        # conv1 (C -> Ch): broadcast-mul + sublane reduce; ReLU;
        # conv2 (Ch -> C): broadcast-mul + lane reduce.  No MXU, no concat.
        h = jnp.maximum(jnp.sum(w1t * pooled, axis=0, keepdims=True), 0.0)   # (1, Ch)
        return jnp.sum(w2 * h, axis=1, keepdims=True)                        # (C, 1)

    ca = jax.nn.sigmoid(mlp(avg_c) + mlp(max_c))         # (C, 1)
    out = x * ca                                         # (C, HW) — stays in VMEM

    # ---- Spatial attention: channel mean/max maps (sublane reduce) and the
    #      7x7 padded conv expressed as one MXU matmul per pooled map.
    avg_s = jnp.mean(out, axis=0, keepdims=True)         # (1, HW)
    max_s = jnp.max(out, axis=0, keepdims=True)          # (1, HW)
    logits = (jnp.dot(avg_s, m_ref[0], preferred_element_type=jnp.float32)
              + jnp.dot(max_s, m_ref[1], preferred_element_type=jnp.float32))  # (1, HW)
    sa = jax.nn.sigmoid(logits)                          # (1, HW)

    res_ref[0] = (out * sa).astype(res_ref.dtype)        # lane-dense store


# --------------------------------------------------------------------------
# Wrapper-side weight pre-processing (one-time layout / weight glue).
# --------------------------------------------------------------------------
def _conv_tap_index(H, W, K):
    """tap[q, p] = flat tap index (dy*K+dx) connecting input pixel q to output
    pixel p of a KxK, stride-1, zero-padded 'same' conv; -1 if unconnected."""
    pad = (K - 1) // 2
    HW = H * W
    tap = np.full((HW, HW), -1, dtype=np.int32)
    ys, xs = np.arange(H), np.arange(W)
    for dy in range(K):
        iy = ys + dy - pad
        vy = (iy >= 0) & (iy < H)
        if not vy.any():
            continue
        for dx in range(K):
            ix = xs + dx - pad
            vx = (ix >= 0) & (ix < W)
            if not vx.any():
                continue
            q = iy[vy][:, None] * W + ix[vx][None, :]
            p = ys[vy][:, None] * W + xs[vx][None, :]
            tap[q, p] = dy * K + dx
    return tap


def _spatial_conv_matrix(wsa, H, W):
    """Lower the (2, K, K) spatial-attention conv (padding 'same', no bias)
    into a dense (2, HW, HW) matrix so the kernel can run it on the MXU."""
    K = int(wsa.shape[-1])
    tap = _conv_tap_index(H, W, K)                               # np (HW, HW)
    wflat = jnp.reshape(wsa, (wsa.shape[0], K * K)).astype(jnp.float32)
    gathered = jnp.take(wflat, jnp.asarray(np.maximum(tap, 0)), axis=1)  # (2, HW, HW)
    return jnp.where(jnp.asarray(tap >= 0)[None, :, :], gathered, 0.0)


def prepare_cbam_weights(w1, w2, wsa, H, W):
    """One-time lowering of the module weights: transpose conv1 for the VPU MLP
    and densify the KxK spatial conv into an MXU-friendly (2, HW, HW) matrix."""
    w1t = jnp.transpose(jnp.asarray(w1))      # (C, Ch)
    m = _spatial_conv_matrix(jnp.asarray(wsa, jnp.float32), H, W)
    return w1t, jnp.asarray(w2), m


@jax.jit
def cbam_apply(x, w1t, w2, m):
    """Hot path: lane-dense reshape + one fused pallas_call over grid=(B,)."""
    B, C, H, W = x.shape
    HW = H * W
    Ch = w1t.shape[1]

    x_flat = x.reshape(B, C, HW)              # lane-dense: HW on the lane axis

    res_flat = pl.pallas_call(
        cbam_kernel,
        out_shape=jax.ShapeDtypeStruct((B, C, HW), x.dtype),
        grid=(B,),
        in_specs=[
            pl.BlockSpec((1, C, HW), lambda b: (b, 0, 0)),
            pl.BlockSpec((C, Ch), lambda b: (0, 0)),
            pl.BlockSpec((C, Ch), lambda b: (0, 0)),
            pl.BlockSpec((2, HW, HW), lambda b: (0, 0, 0)),
        ],
        out_specs=pl.BlockSpec((1, C, HW), lambda b: (b, 0, 0)),
        compiler_params=pltpu.CompilerParams(
            dimension_semantics=("parallel",),           # batch across TCs (v7x)
            vmem_limit_bytes=32 * 1024 * 1024,
        ),
    )(x_flat, w1t, w2, m)
    return res_flat.reshape(B, C, H, W)


def cbam_pallas(x, w1, w2, wsa):
    B, C, H, W = x.shape
    w1t, w2p, m = prepare_cbam_weights(w1, w2, wsa, H, W)
    return cbam_apply(x, w1t, w2p, m)


# --------------------------------------------------------------------------
# Pure numpy reference (float64) for validation.
# --------------------------------------------------------------------------
def cbam_ref(x, w1, w2, wsa):
    xb = np.asarray(x, dtype=np.float64)
    w1 = np.asarray(w1, dtype=np.float64)
    w2 = np.asarray(w2, dtype=np.float64)
    wsa = np.asarray(wsa, dtype=np.float64)
    B, C, H, W = xb.shape

    def sigmoid(v):
        return 1.0 / (1.0 + np.exp(-v))

    avg = xb.mean(axis=(2, 3))                            # (B, C)
    mx = xb.max(axis=(2, 3))                              # (B, C)

    def mlp(v):
        return np.maximum(v @ w1.T, 0.0) @ w2.T           # (B, C)

    ca = sigmoid(mlp(avg) + mlp(mx))                      # (B, C)
    out = xb * ca[:, :, None, None]

    avg_s = out.mean(axis=1)                              # (B, H, W)
    max_s = out.max(axis=1)
    maps = np.stack([avg_s, max_s], axis=1)               # (B, 2, H, W)
    K = wsa.shape[-1]
    pad = (K - 1) // 2
    pm = np.pad(maps, ((0, 0), (0, 0), (pad, pad), (pad, pad)))
    logits = np.zeros((B, H, W))
    for c in range(2):
        for dy in range(K):
            for dx in range(K):
                logits += wsa[c, dy, dx] * pm[:, c, dy:dy + H, dx:dx + W]
    sa = sigmoid(logits)
    return out * sa[:, None, :, :]


if __name__ == "__main__":
    B, C, H, W = 2, 32, 16, 16          # in_planes=32, ratio=16 -> hidden=2
    ratio = 16
    Ch = C // ratio

    key = jax.random.PRNGKey(0)
    kx, k1, k2, k3 = jax.random.split(key, 4)

    x = jax.random.normal(kx, (B, C, H, W), jnp.float32)
    # deterministic synthetic weights (kaiming-like scales)
    w1 = jax.random.normal(k1, (Ch, C), jnp.float32) * np.sqrt(2.0 / C)
    w2 = jax.random.normal(k2, (C, Ch), jnp.float32) * np.sqrt(2.0 / Ch)
    wsa = jax.random.normal(k3, (2, 7, 7), jnp.float32) * 0.1

    result = jax.block_until_ready(cbam_pallas(x, w1, w2, wsa))

    ref = cbam_ref(np.asarray(x), np.asarray(w1), np.asarray(w2), np.asarray(wsa))
    np.testing.assert_allclose(np.asarray(result), ref, atol=1e-4, rtol=1e-4)

    print("KERNEL_OK")
</pallas_src>

<mosaic_0001>
module attributes {stable_mosaic.version = 11 : i64} {
  func.func @cbam_kernel(%arg0: i32, %arg1: memref<1x32x256xf32, #tpu.memory_space<vmem>>, %arg2: memref<32x2xf32, #tpu.memory_space<vmem>>, %arg3: memref<32x2xf32, #tpu.memory_space<vmem>>, %arg4: memref<2x256x256xf32, #tpu.memory_space<vmem>>, %arg5: memref<1x32x256xf32, #tpu.memory_space<vmem>>) attributes {dimension_semantics = [#tpu.dimension_semantics<parallel>], iteration_bounds = array<i64: 2>, scalar_prefetch = 0 : i64, scratch_operands = 0 : i64, tpu.core_type = #tpu.core_type<tc>, window_params = [{transform_indices = @transform_0, window_bounds = array<i64: 1, 32, 256>}, {pipeline_mode = #tpu.pipeline_mode<synchronous>, transform_indices = @transform_1, window_bounds = array<i64: 32, 2>}, {pipeline_mode = #tpu.pipeline_mode<synchronous>, transform_indices = @transform_2, window_bounds = array<i64: 32, 2>}, {pipeline_mode = #tpu.pipeline_mode<synchronous>, transform_indices = @transform_3, window_bounds = array<i64: 2, 256, 256>}, {transform_indices = @transform_4, window_bounds = array<i64: 1, 32, 256>}]} {
    %c0 = arith.constant 0 : index
    %c0_0 = arith.constant 0 : index
    %c0_1 = arith.constant 0 : index
    %0 = vector.load %arg1[%c0, %c0_0, %c0_1] : memref<1x32x256xf32, #tpu.memory_space<vmem>>, vector<1x32x256xf32>
    %1 = vector.shape_cast %0 : vector<1x32x256xf32> to vector<32x256xf32>
    %c0_2 = arith.constant 0 : index
    %c0_3 = arith.constant 0 : index
    %2 = vector.load %arg2[%c0_2, %c0_3] : memref<32x2xf32, #tpu.memory_space<vmem>>, vector<32x2xf32>
    %c0_4 = arith.constant 0 : index
    %c0_5 = arith.constant 0 : index
    %3 = vector.load %arg3[%c0_4, %c0_5] : memref<32x2xf32, #tpu.memory_space<vmem>>, vector<32x2xf32>
    %cst = arith.constant dense<0.000000e+00> : vector<32xf32>
    %4 = vector.multi_reduction <add>, %1, %cst [1] : vector<32x256xf32> to vector<32xf32>
    %5 = vector.shape_cast %4 : vector<32xf32> to vector<32x1xf32>
    %cst_6 = arith.constant 2.560000e+02 : f32
    %6 = vector.broadcast %cst_6 : f32 to vector<32x1xf32>
    %7 = arith.divf %5, %6 : vector<32x1xf32>
    %cst_7 = arith.constant dense<0xFF800000> : vector<32xf32>
    %8 = vector.multi_reduction <maximumf>, %1, %cst_7 [1] : vector<32x256xf32> to vector<32xf32>
    %9 = vector.shape_cast %8 : vector<32xf32> to vector<32x1xf32>
    %10 = vector.broadcast %7 : vector<32x1xf32> to vector<32x2xf32>
    %11 = arith.mulf %2, %10 : vector<32x2xf32>
    %cst_8 = arith.constant dense<0.000000e+00> : vector<2xf32>
    %12 = vector.multi_reduction <add>, %11, %cst_8 [0] : vector<32x2xf32> to vector<2xf32>
    %13 = vector.shape_cast %12 : vector<2xf32> to vector<1x2xf32>
    %cst_9 = arith.constant 0.000000e+00 : f32
    %14 = vector.broadcast %cst_9 : f32 to vector<1x2xf32>
    %15 = arith.maximumf %13, %14 : vector<1x2xf32>
    %16 = vector.broadcast %15 : vector<1x2xf32> to vector<32x2xf32>
    %17 = arith.mulf %3, %16 : vector<32x2xf32>
    %cst_10 = arith.constant dense<0.000000e+00> : vector<32xf32>
    %18 = vector.multi_reduction <add>, %17, %cst_10 [1] : vector<32x2xf32> to vector<32xf32>
    %19 = vector.shape_cast %18 : vector<32xf32> to vector<32x1xf32>
    %20 = vector.broadcast %9 : vector<32x1xf32> to vector<32x2xf32>
    %21 = arith.mulf %2, %20 : vector<32x2xf32>
    %cst_11 = arith.constant dense<0.000000e+00> : vector<2xf32>
    %22 = vector.multi_reduction <add>, %21, %cst_11 [0] : vector<32x2xf32> to vector<2xf32>
    %23 = vector.shape_cast %22 : vector<2xf32> to vector<1x2xf32>
    %cst_12 = arith.constant 0.000000e+00 : f32
    %24 = vector.broadcast %cst_12 : f32 to vector<1x2xf32>
    %25 = arith.maximumf %23, %24 : vector<1x2xf32>
    %26 = vector.broadcast %25 : vector<1x2xf32> to vector<32x2xf32>
    %27 = arith.mulf %3, %26 : vector<32x2xf32>
    %cst_13 = arith.constant dense<0.000000e+00> : vector<32xf32>
    %28 = vector.multi_reduction <add>, %27, %cst_13 [1] : vector<32x2xf32> to vector<32xf32>
    %29 = vector.shape_cast %28 : vector<32xf32> to vector<32x1xf32>
    %30 = arith.addf %19, %29 : vector<32x1xf32>
    %31 = arith.negf %30 : vector<32x1xf32>
    %32 = math.exp %31 : vector<32x1xf32>
    %cst_14 = arith.constant 1.000000e+00 : f32
    %33 = vector.broadcast %cst_14 : f32 to vector<32x1xf32>
    %34 = arith.addf %33, %32 : vector<32x1xf32>
    %35 = arith.divf %33, %34 : vector<32x1xf32>
    %36 = vector.broadcast %35 : vector<32x1xf32> to vector<32x256xf32>
    %37 = arith.mulf %1, %36 : vector<32x256xf32>
    %cst_15 = arith.constant dense<0.000000e+00> : vector<256xf32>
    %38 = vector.multi_reduction <add>, %37, %cst_15 [0] : vector<32x256xf32> to vector<256xf32>
    %39 = vector.shape_cast %38 : vector<256xf32> to vector<1x256xf32>
    %cst_16 = arith.constant 3.200000e+01 : f32
    %40 = vector.broadcast %cst_16 : f32 to vector<1x256xf32>
    %41 = arith.divf %39, %40 : vector<1x256xf32>
    %cst_17 = arith.constant dense<0xFF800000> : vector<256xf32>
    %42 = vector.multi_reduction <maximumf>, %37, %cst_17 [0] : vector<32x256xf32> to vector<256xf32>
    %43 = vector.shape_cast %42 : vector<256xf32> to vector<1x256xf32>
    %c0_18 = arith.constant 0 : index
    %c0_19 = arith.constant 0 : index
    %c0_20 = arith.constant 0 : index
    %44 = vector.load %arg4[%c0_18, %c0_19, %c0_20] : memref<2x256x256xf32, #tpu.memory_space<vmem>>, vector<1x256x256xf32>
    %45 = vector.shape_cast %44 : vector<1x256x256xf32> to vector<256x256xf32>
    %cst_21 = arith.constant dense<0.000000e+00> : vector<1x256xf32>
    %46 = tpu.matmul %41, %45, %cst_21 {dimension_numbers = #tpu.dot_dimension_numbers<[1], [0], [0], [1], [0, 0, 1, 1], [], []>} : vector<1x256xf32>, vector<256x256xf32>, vector<1x256xf32> -> vector<1x256xf32>
    %c1 = arith.constant 1 : index
    %c0_22 = arith.constant 0 : index
    %c0_23 = arith.constant 0 : index
    %47 = vector.load %arg4[%c1, %c0_22, %c0_23] : memref<2x256x256xf32, #tpu.memory_space<vmem>>, vector<1x256x256xf32>
    %48 = vector.shape_cast %47 : vector<1x256x256xf32> to vector<256x256xf32>
    %cst_24 = arith.constant dense<0.000000e+00> : vector<1x256xf32>
    %49 = tpu.matmul %43, %48, %cst_24 {dimension_numbers = #tpu.dot_dimension_numbers<[1], [0], [0], [1], [0, 0, 1, 1], [], []>} : vector<1x256xf32>, vector<256x256xf32>, vector<1x256xf32> -> vector<1x256xf32>
    %50 = arith.addf %46, %49 : vector<1x256xf32>
    %51 = arith.negf %50 : vector<1x256xf32>
    %52 = math.exp %51 : vector<1x256xf32>
    %cst_25 = arith.constant 1.000000e+00 : f32
    %53 = vector.broadcast %cst_25 : f32 to vector<1x256xf32>
    %54 = arith.addf %53, %52 : vector<1x256xf32>
    %55 = arith.divf %53, %54 : vector<1x256xf32>
    %56 = vector.broadcast %55 : vector<1x256xf32> to vector<32x256xf32>
    %57 = arith.mulf %37, %56 : vector<32x256xf32>
    %c0_26 = arith.constant 0 : index
    %c0_27 = arith.constant 0 : index
    %c0_28 = arith.constant 0 : index
    %58 = vector.load %arg5[%c0_26, %c0_27, %c0_28] : memref<1x32x256xf32, #tpu.memory_space<vmem>>, vector<1x32x256xf32>
    %59 = vector.shape_cast %58 : vector<1x32x256xf32> to vector<32x256xf32>
    %60 = vector.shape_cast %57 : vector<32x256xf32> to vector<1x32x256xf32>
    tpu.vector_store %arg5[%c0_26, %c0_27, %c0_28], %60 {strides = array<i32>} : memref<1x32x256xf32, #tpu.memory_space<vmem>>, vector<1x32x256xf32>,
    return
  }
  func.func @transform_0(%arg0: i32) -> (i32, i32, i32) {
    %c0_i32 = arith.constant 0 : i32
    %c0_i32_0 = arith.constant 0 : i32
    %c0_i32_1 = arith.constant 0 : i32
    return %arg0, %c0_i32, %c0_i32_0 : i32, i32, i32
  }
  func.func @transform_1(%arg0: i32) -> (i32, i32) {
    %c0_i32 = arith.constant 0 : i32
    %c0_i32_0 = arith.constant 0 : i32
    %c0_i32_1 = arith.constant 0 : i32
    return %c0_i32, %c0_i32_0 : i32, i32
  }
  func.func @transform_2(%arg0: i32) -> (i32, i32) {
    %c0_i32 = arith.constant 0 : i32
    %c0_i32_0 = arith.constant 0 : i32
    %c0_i32_1 = arith.constant 0 : i32
    return %c0_i32, %c0_i32_0 : i32, i32
  }
  func.func @transform_3(%arg0: i32) -> (i32, i32, i32) {
    %c0_i32 = arith.constant 0 : i32
    %c0_i32_0 = arith.constant 0 : i32
    %c0_i32_1 = arith.constant 0 : i32
    %c0_i32_2 = arith.constant 0 : i32
    return %c0_i32, %c0_i32_0, %c0_i32_1 : i32, i32, i32
  }
  func.func @transform_4(%arg0: i32) -> (i32, i32, i32) {
    %c0_i32 = arith.constant 0 : i32
    %c0_i32_0 = arith.constant 0 : i32
    %c0_i32_1 = arith.constant 0 : i32
    return %arg0, %c0_i32, %c0_i32_0 : i32, i32, i32
  }
}

</mosaic_0001>

<bundles_post_ra>
// kernel: cbam_apply.1
= control target key start
LH: loop header
LB: loop body
LE: loop exit
PB: predicated region body
PF: predicated region fallthrough
CT: control target
= control target key end

     0   :  { %9 = vsyncpa [#allocation3], 0  ;;  %s1024_s15 = smov 0   ;;  %s1271_s0 = inlined_call_operand.vmem [shape: f32[2,32,256], index: 0, kind: input, shape index: {}]   ;;  %s1272_s1 = inlined_call_operand.vmem [shape: f32[32,2], index: 1, kind: input, shape index: {}]   ;;  %s1273_s2 = inlined_call_operand.vmem [shape: f32[32,2], index: 2, kind: input, shape index: {}]   ;;  %s1274_s3 = inlined_call_operand.hbm [shape: f32[2,256,256], index: 3, kind: input, shape index: {}]   ;;  %s1275_s4 = inlined_call_operand.vmem [shape: f32[2,32,256], index: 4, kind: output, shape index: {}]  }
   0x1 LB: > { %s152_s18 = sshll.u32 %s1274_s3, 4  ;;  %s880_s19 = sadd.s32 4294967295, %s992_s15   ;;  %s992_s15 = sphi %s1024_s15, %s15_s15   ;;  %s153_s18 = int_to_ptr.hbm [resolvable:$true] %s152_s18 }
   0x2   : > { %p882_p0 = scmp.ge.s32.totalorder %s992_s15, 1  ;;  %p135_p1 = scmp.lt.s32.totalorder %s992_s15, 3 }
   0x3   : > { %p909_p2 = scmp.eq.s32.totalorder %s880_s19, 0  ;;  %s994_s20 = smov [#allocation2]  }
   0x4   : > { %p136_p3 = pnand %p882_p0, %p135_p1  ;;  %s154_s21 = sshll.u32 %s994_s20, 4  ;;  %s155_s21 = int_to_ptr.vmem [resolvable:$true] %s154_s21 }
   0x5   : > { %s995_s22 = smov 256   ;;  %s996_s23 = smov 16  }
   0x6   : > { %p905_p4 = pneg %p136_p3  ;;  %178 = sbr.rel (%p136_p3) target bundleno = 538 (0x21a), region = 36 }
   0x8   : > { %p906_p5 = pnand %p909_p2, %p905_p4 }
   0xa   : > { %908 = dma.hbm_to_vmem [thread:$0]  (!%p906_p5), %s153_s18, 16384, %s155_s21, [#allocation3], %s995_s22, %s995_s22, %s996_s23  }
   0xb   : > { %987 = dma.done.wait (%p909_p2), [#allocation3], 16384  }
   0xc   : > { %989 = vsyncadd (%p909_p2), [#allocation3], 4294950912  ;;  %p205_p6 = scmp.lt.s32.totalorder %s880_s19, 1  ;;  %v997_v16 = vmov 256.0   ;;  %v223_v27 = vld [vmem:[%s1272_s1] sm:$0xff]  ;;  %v224_v29 = vld [vmem:[%s1272_s1 + $0x8] sm:$0xff] }
   0xd   : > { %924 = vrcp.f32 %v997_v16  ;;  %v225_v33 = vld [vmem:[%s1272_s1 + $0x10] sm:$0xff]  ;;  %v226_v34 = vld [vmem:[%s1272_s1 + $0x18] sm:$0xff]  ;;  %vm270_vm1 = vcmask 15360   ;;  %v227_v16 = vld [vmem:[%s1273_s2] sm:$0xff] }
   0xe   : > { %s1287_s19 = smov (!%p205_p6, %s880_s19), 1 }
   0xf   : > { %s899_s24 = sshll.u32 %s1287_s19, 6 }
  0x10   : > { %s209_s27 = scalar_lea.vmem %s1271_s0, %s899_s24  ;;  %s214_s22 = scalar_lea.vmem %s1275_s4, %s899_s24 }
  0x11   : > { %v1043_v0 = vld [vmem:[%s209_s27 + $0x20] sm:$0xff]  ;;  %v1045_v1 = vld [vmem:[%s209_s27 + $0x28] sm:$0xff]  ;;  %v1053_v5 = vld [vmem:[%s209_s27 + $0x10] sm:$0xff] }
  0x12   : > { %v1047_v2 = vld [vmem:[%s209_s27] sm:$0xff]  ;;  %v237_v3 = vadd.f32 %v1045_v1, %v1043_v0  ;;  %v1051_v4 = vld [vmem:[%s209_s27 + $0x8] sm:$0xff]  ;;  %v1055_v6 = vld [vmem:[%s209_s27 + $0x18] sm:$0xff]  ;;  %v260_v15 = vmax.f32 %v1043_v0, %v1045_v1 }
  0x13   : > { %v231_v7 = vadd.f32 %v1051_v4, %v1047_v2  ;;  %v257_v8 = vmax.f32 %v1053_v5, %v1055_v6  ;;  %v1061_v9 = vld [vmem:[%s209_s27 + $0x30] sm:$0xff]  ;;  %v1063_v10 = vld [vmem:[%s209_s27 + $0x38] sm:$0xff]  ;;  %v254_v11 = vmax.f32 %v1047_v2, %v1051_v4  ;;  %v234_v12 = vadd.f32 %v1055_v6, %v1053_v5  ;;  %v925_v17 = vpop.eup %924 }
  0x14   : > { %238 = vadd.xlane.f32.xlu1 %v237_v3  ;;  %v240_v13 = vadd.f32 %v1063_v10, %v1061_v9  ;;  %v263_v14 = vmax.f32 %v1061_v9, %v1063_v10  ;;  %v244_v18 = vmul.f32 256.0, %v925_v17  ;;  %vm248_vm0 = vweird.f32 %v925_v17 }
  0x15   : > { %232 = vadd.xlane.f32.xlu0 %v231_v7  ;;  %258 = vmax.xlane.f32.xlu2 %v257_v8 }
  0x16   : > { %v245_v19 = vsub.f32 1.0, %v244_v18 }
  0x18   : > { %v246_v20 = vmul.f32 %v925_v17, %v245_v19 }
  0x1a   : > { %v247_v21 = vadd.f32 %v925_v17, %v246_v20 }
  0x1c   : > { %255 = vmax.xlane.f32.xlu1 %v254_v11  ;;  %v249_v25 = vsel %vm248_vm0, %v925_v17, %v247_v21 }
  0x1d   : > { %235 = vadd.xlane.f32.xlu0 %v234_v12  ;;  %241 = vadd.xlane.f32.xlu2 %v240_v13 }
  0x24   : > { %264 = vmax.xlane.f32.xlu1 %v263_v14 }
  0x25   : > { %261 = vmax.xlane.f32.xlu0 %v260_v15  ;;  %v229_v15 = vld [vmem:[%s1273_s2 + $0x10] sm:$0xff] }
  0x87   : > { %v239_v22 = vpop.xlane.xlu1 %238 }
  0x88   : > { %v233_v23 = vpop.xlane.xlu0 %232  ;;  %v259_v24 = vpop.xlane.xlu2 %258  ;;  %v252_v28 = vmul.f32 %v249_v25, %v239_v22 }
  0x89   : > { %v250_v26 = vmul.f32 %v249_v25, %v233_v23  ;;  %v302_v38 = vmul.f32 %v259_v24, %v224_v29 }
  0x8a   : > { %v268_v41 = vmul.f32 %v252_v28, %v225_v33 }
  0x8b   : > { %v266_v35 = vmul.f32 %v250_v26, %v223_v27  ;;  %v306_v46 = vsel %vm270_vm1, %v302_v38, 0.0 }
  0x8c   : > { %v274_v48 = vsel %vm270_vm1, %v268_v41, 0.0  ;;  %v564_v41 = vld [vmem:[#allocation2 + $0x2f8] sm:$0xff] }
  0x8d   : > { %v271_v43 = vsel %vm270_vm1, %v266_v35, 0.0  ;;  %637 = vmatpush.msra.mxu2 %v564_v41  ;;  %v537_v41 = vld [vmem:[#allocation2 + $0x220] sm:$0xff] }
  0x8f   : > { %v256_v30 = vpop.xlane.xlu1 %255 }
  0x90   : > { %v236_v31 = vpop.xlane.xlu0 %235  ;;  %v242_v32 = vpop.xlane.xlu2 %241  ;;  %v301_v39 = vmul.f32 %v256_v30, %v223_v27  ;;  %v228_v27 = vld [vmem:[%s1273_s2 + $0x8] sm:$0xff] }
  0x91   : > { %v251_v36 = vmul.f32 %v249_v25, %v236_v31  ;;  %v253_v37 = vmul.f32 %v249_v25, %v242_v32  ;;  %v230_v25 = vld [vmem:[%s1273_s2 + $0x18] sm:$0xff] }
  0x92   : > { %v305_v47 = vsel %vm270_vm1, %v301_v39, 0.0  ;;  %v563_v39 = vld [vmem:[#allocation2 + $0x2f0] sm:$0xff] }
  0x93   : > { %v267_v40 = vmul.f32 %v251_v36, %v224_v29  ;;  %v269_v42 = vmul.f32 %v253_v37, %v226_v34  ;;  %v307_v55 = vadd.f32 %v306_v46, %v305_v47  ;;  %597 = vmatpush.msra.mxu0 %v563_v39  ;;  %v594_v46 = vld [vmem:[#allocation2 + $0x3e8] sm:$0xff]  ;;  %v559_v47 = vld [vmem:[#allocation2 + $0x2d0] sm:$0xff] }
  0x95   : > { %v272_v44 = vsel %vm270_vm1, %v267_v40, 0.0  ;;  %v276_v49 = vsel %vm270_vm1, %v269_v42, 0.0  ;;  %v595_v40 = vld [vmem:[#allocation2 + $0x3f0] sm:$0xff]  ;;  %v596_v42 = vld [vmem:[#allocation2 + $0x3f8] sm:$0xff] }
  0x96   : > { %v273_v45 = vadd.f32 %v272_v44, %v271_v43  ;;  %617 = vmatpush.msra.mxu1 %v595_v40  ;;  %657 = vmatpush.msra.mxu3 %v596_v42  ;;  %v561_v43 = vld [vmem:[#allocation2 + $0x2e0] sm:$0xff]  ;;  %v572_v40 = vld [vmem:[#allocation2 + $0x338] sm:$0xff] }
  0x97   : > { %v265_v50 = vpop.xlane.xlu1 %264  ;;  %v593_v44 = vld [vmem:[#allocation2 + $0x3e0] sm:$0xff]  ;;  %598 = vmatpush.msra.mxu0 %v561_v43  ;;  %v538_v43 = vld [vmem:[#allocation2 + $0x228] sm:$0xff] }
  0x98   : > { %v275_v51 = vadd.f32 %v274_v48, %v273_v45  ;;  %v262_v52 = vpop.xlane.xlu0 %261  ;;  %v304_v53 = vmul.f32 %v265_v50, %v226_v34  ;;  %v562_v45 = vld [vmem:[#allocation2 + $0x2e8] sm:$0xff]  ;;  %618 = vmatpush.msra.mxu1 %v593_v44  ;;  %658 = vmatpush.msra.mxu3 %v594_v46  ;;  %v591_v48 = vld [vmem:[#allocation2 + $0x3d0] sm:$0xff]  ;;  %v592_v50 = vld [vmem:[#allocation2 + $0x3d8] sm:$0xff] }
  0x99   : > { %v303_v54 = vmul.f32 %v262_v52, %v225_v33  ;;  %638 = vmatpush.msra.mxu2 %v562_v45  ;;  %599 = vmatpush.msra.mxu0 %v559_v47  ;;  %v589_v52 = vld [vmem:[#allocation2 + $0x3c0] sm:$0xff]  ;;  %v570_v44 = vld [vmem:[#allocation2 + $0x328] sm:$0xff]  ;;  %v535_v45 = vld [vmem:[#allocation2 + $0x210] sm:$0xff] }
  0x9a   : > { %v277_v56 = vadd.f32 %v276_v49, %v275_v51  ;;  %v310_v58 = vsel %vm270_vm1, %v304_v53, 0.0  ;;  %v560_v49 = vld [vmem:[#allocation2 + $0x2d8] sm:$0xff]  ;;  %619 = vmatpush.msra.mxu1 %v591_v48  ;;  %659 = vmatpush.msra.mxu3 %v592_v50  ;;  %v557_v51 = vld [vmem:[#allocation2 + $0x2c0] sm:$0xff]  ;;  %v558_v53 = vld [vmem:[#allocation2 + $0x2c8] sm:$0xff] }
  0x9b   : > { %v308_v57 = vsel %vm270_vm1, %v303_v54, 0.0  ;;  %639 = vmatpush.msra.mxu2 %v560_v49  ;;  %600 = vmatpush.msra.mxu0 %v557_v51  ;;  %v590_v54 = vld [vmem:[#allocation2 + $0x3c8] sm:$0xff]  ;;  %v569_v42 = vld [vmem:[#allocation2 + $0x320] sm:$0xff]  ;;  %v567_v46 = vld [vmem:[#allocation2 + $0x310] sm:$0xff] }
  0x9c   : > { %v309_v59 = vadd.f32 %v308_v57, %v307_v55  ;;  %v278_v60 = vrot.slane %v277_v56, 4  ;;  %620 = vmatpush.msra.mxu1 %v589_v52  ;;  %660 = vmatpush.msra.mxu3 %v590_v54  ;;  %v555_v55 = vld [vmem:[#allocation2 + $0x2b0] sm:$0xff]  ;;  %v556_v57 = vld [vmem:[#allocation2 + $0x2b8] sm:$0xff]  ;;  %v533_v52 = vld [vmem:[#allocation2 + $0x200] sm:$0xff] }
  0x9d   : > { %640 = vmatpush.msra.mxu2 %v558_v53  ;;  %601 = vmatpush.msra.mxu0 %v555_v55  ;;  %v536_v47 = vld [vmem:[#allocation2 + $0x218] sm:$0xff]  ;;  %v565_v53 = vld [vmem:[#allocation2 + $0x300] sm:$0xff]  ;;  %v534_v54 = vld [vmem:[#allocation2 + $0x208] sm:$0xff] }
  0x9e   : > { %v279_v61 = vadd.f32 %v278_v60, %v277_v56  ;;  %v311_v62 = vadd.f32 %v310_v58, %v309_v59  ;;  %v587_v56 = vld [vmem:[#allocation2 + $0x3b0] sm:$0xff]  ;;  %v588_v58 = vld [vmem:[#allocation2 + $0x3b8] sm:$0xff]  ;;  %v553_v59 = vld [vmem:[#allocation2 + $0x2a0] sm:$0xff] }
  0x9f   : > { %621 = vmatpush.msra.mxu1 %v587_v56  ;;  %641 = vmatpush.msra.mxu2 %v556_v57  ;;  %v585_v60 = vld [vmem:[#allocation2 + $0x3a0] sm:$0xff]  ;;  %v568_v50 = vld [vmem:[#allocation2 + $0x318] sm:$0xff]  ;;  %v566_v55 = vld [vmem:[#allocation2 + $0x308] sm:$0xff] }
  0xa0   : > { %v280_v63 = vrot.slane %v279_v61, 2  ;;  %v312_v3 = vrot.slane %v311_v62, 4  ;;  %661 = vmatpush.msra.mxu3 %v588_v58  ;;  %602 = vmatpush.msra.mxu0 %v553_v59  ;;  %v498_v56 = vld [vmem:[#allocation2 + $0xf0] sm:$0xff] }
  0xa1   : > { %622 = vmatpush.msra.mxu1 %v585_v60  ;;  %v530_v57 = vld [vmem:[#allocation2 + $0x1f0] sm:$0xff]  ;;  %v499_v60 = vld [vmem:[#allocation2 + $0xf8] sm:$0xff] }
  0xa2   : > { %v281_v7 = vadd.f32 %v280_v63, %v279_v61  ;;  %v313_v8 = vadd.f32 %v312_v3, %v311_v62  ;;  %v554_v61 = vld [vmem:[#allocation2 + $0x2a8] sm:$0xff]  ;;  %v551_v63 = vld [vmem:[#allocation2 + $0x290] sm:$0xff] }
  0xa3   : > { %v586_v62 = vld [vmem:[#allocation2 + $0x3a8] sm:$0xff]  ;;  %642 = vmatpush.msra.mxu2 %v554_v61  ;;  %v583_v3 = vld [vmem:[#allocation2 + $0x390] sm:$0xff]  ;;  %603 = vmatpush.msra.mxu0 %v551_v63  ;;  %v531_v61 = vld [vmem:[#allocation2 + $0x1f8] sm:$0xff] }
  0xa4   : > { %v282_v11 = vrot.slane %v281_v7, 1  ;;  %v314_v12 = vrot.slane %v313_v8, 2  ;;  %662 = vmatpush.msra.mxu3 %v586_v62  ;;  %623 = vmatpush.msra.mxu1 %v583_v3  ;;  %v496_v62 = vld [vmem:[#allocation2 + $0xe0] sm:$0xff] }
  0xa6   : > { %v315_v13 = vadd.f32 %v314_v12, %v313_v8  ;;  %v283_v14 = vadd.f32 %v282_v11, %v281_v7  ;;  %v552_v7 = vld [vmem:[#allocation2 + $0x298] sm:$0xff]  ;;  %v549_v11 = vld [vmem:[#allocation2 + $0x280] sm:$0xff] }
  0xa7   : > { %v584_v8 = vld [vmem:[#allocation2 + $0x398] sm:$0xff]  ;;  %643 = vmatpush.msra.mxu2 %v552_v7  ;;  %v581_v12 = vld [vmem:[#allocation2 + $0x380] sm:$0xff]  ;;  %604 = vmatpush.msra.mxu0 %v549_v11  ;;  %v529_v11 = vld [vmem:[#allocation2 + $0x1e8] sm:$0xff] }
  0xa8   : > { %v316_v17 = vrot.slane %v315_v13, 1  ;;  %v284_v18 = vmax.f32 %v283_v14, 0.0  ;;  %663 = vmatpush.msra.mxu3 %v584_v8  ;;  %624 = vmatpush.msra.mxu1 %v581_v12  ;;  %v582_v14 = vld [vmem:[#allocation2 + $0x388] sm:$0xff]  ;;  %v528_v7 = vld [vmem:[#allocation2 + $0x1e0] sm:$0xff] }
  0xa9   : > { %v497_v8 = vld [vmem:[#allocation2 + $0xe8] sm:$0xff] }
  0xaa   : > { %v317_v19 = vadd.f32 %v316_v17, %v315_v13  ;;  %v287_v20 = vmul.f32 %v284_v18, %v229_v15  ;;  %v285_v21 = vmul.f32 %v284_v18, %v227_v16  ;;  %v288_v29 = vmul.f32 %v284_v18, %v230_v25  ;;  %v550_v13 = vld [vmem:[#allocation2 + $0x288] sm:$0xff]  ;;  %664 = vmatpush.msra.mxu3 %v582_v14  ;;  %v548_v17 = vld [vmem:[#allocation2 + $0x278] sm:$0xff]  ;;  %v526_v14 = vld [vmem:[#allocation2 + $0x1d0] sm:$0xff] }
  0xab   : > { %v286_v33 = vmul.f32 %v284_v18, %v228_v27  ;;  %644 = vmatpush.msra.mxu2 %v550_v13  ;;  %v494_v13 = vld [vmem:[#allocation2 + $0xd0] sm:$0xff] }
  0xac   : > { %v318_v22 = vmax.f32 %v317_v19, 0.0  ;;  %v295_v23 = vsel %vm270_vm1, %v287_v20, 0.0  ;;  %v289_v24 = vsel %vm270_vm1, %v285_v21, 0.0  ;;  %v298_v31 = vsel %vm270_vm1, %v288_v29, 0.0  ;;  %v580_v19 = vld [vmem:[#allocation2 + $0x378] sm:$0xff]  ;;  %v545_v20 = vld [vmem:[#allocation2 + $0x260] sm:$0xff] }
  0xad   : > { %296 = vadd.xlane.f32.xlu1 %v295_v23  ;;  %290 = vadd.xlane.f32.xlu2 %v289_v24  ;;  %v292_v34 = vsel %vm270_vm1, %v286_v33, 0.0  ;;  %v577_v21 = vld [vmem:[#allocation2 + $0x360] sm:$0xff]  ;;  %v578_v24 = vld [vmem:[#allocation2 + $0x368] sm:$0xff]  ;;  %v576_v29 = vld [vmem:[#allocation2 + $0x358] sm:$0xff] }
  0xae   : > { %v319_v26 = vmul.f32 %v318_v22, %v227_v16  ;;  %v320_v30 = vmul.f32 %v318_v22, %v228_v27  ;;  %v321_v35 = vmul.f32 %v318_v22, %v229_v15  ;;  %v322_v37 = vmul.f32 %v318_v22, %v230_v25  ;;  %v547_v15 = vld [vmem:[#allocation2 + $0x270] sm:$0xff]  ;;  %645 = vmatpush.msra.mxu2 %v548_v17  ;;  %v546_v22 = vld [vmem:[#allocation2 + $0x268] sm:$0xff]  ;;  %v544_v27 = vld [vmem:[#allocation2 + $0x258] sm:$0xff] }
  0xaf   : > { %v579_v16 = vld [vmem:[#allocation2 + $0x370] sm:$0xff]  ;;  %605 = vmatpush.msra.mxu0 %v547_v15  ;;  %665 = vmatpush.msra.mxu3 %v580_v19  ;;  %v542_v33 = vld [vmem:[#allocation2 + $0x248] sm:$0xff]  ;;  %v495_v15 = vld [vmem:[#allocation2 + $0xd8] sm:$0xff] }
  0xb0   : > { %v323_v28 = vsel %vm270_vm1, %v319_v26, 0.0  ;;  %v326_v32 = vsel %vm270_vm1, %v320_v30, 0.0  ;;  %v329_v36 = vsel %vm270_vm1, %v321_v35, 0.0  ;;  %v332_v38 = vsel %vm270_vm1, %v322_v37, 0.0  ;;  %625 = vmatpush.msra.mxu1 %v579_v16  ;;  %646 = vmatpush.msra.mxu2 %v546_v22  ;;  %v543_v25 = vld [vmem:[#allocation2 + $0x250] sm:$0xff]  ;;  %v527_v16 = vld [vmem:[#allocation2 + $0x1d8] sm:$0xff] }
  0xb1   : > { %324 = vadd.xlane.f32.xlu0 %v323_v28  ;;  %606 = vmatpush.msra.mxu0 %v545_v20  ;;  %v575_v26 = vld [vmem:[#allocation2 + $0x350] sm:$0xff]  ;;  %v524_v19 = vld [vmem:[#allocation2 + $0x1c0] sm:$0xff]  ;;  %v525_v22 = vld [vmem:[#allocation2 + $0x1c8] sm:$0xff] }
  0xb2   : > { %626 = vmatpush.msra.mxu1 %v577_v21  ;;  %666 = vmatpush.msra.mxu3 %v578_v24  ;;  %v571_v37 = vld [vmem:[#allocation2 + $0x330] sm:$0xff]  ;;  %v493_v21 = vld [vmem:[#allocation2 + $0xc8] sm:$0xff] }
  0xb3   : > { %607 = vmatpush.msra.mxu0 %v543_v25  ;;  %647 = vmatpush.msra.mxu2 %v544_v27  ;;  %v490_v24 = vld [vmem:[#allocation2 + $0xb0] sm:$0xff]  ;;  %v523_v27 = vld [vmem:[#allocation2 + $0x1b8] sm:$0xff] }
  0xb4   : > { %627 = vmatpush.msra.mxu1 %v575_v26  ;;  %667 = vmatpush.msra.mxu3 %v576_v29  ;;  %v522_v25 = vld [vmem:[#allocation2 + $0x1b0] sm:$0xff]  ;;  %v491_v26 = vld [vmem:[#allocation2 + $0xb8] sm:$0xff] }
  0xb5   : > { %299 = vadd.xlane.f32.xlu2 %v298_v31  ;;  %327 = vadd.xlane.f32.xlu1 %v326_v32  ;;  %v541_v31 = vld [vmem:[#allocation2 + $0x240] sm:$0xff] }
  0xb6   : > { %v573_v32 = vld [vmem:[#allocation2 + $0x340] sm:$0xff]  ;;  %608 = vmatpush.msra.mxu0 %v541_v31  ;;  %648 = vmatpush.msra.mxu2 %v542_v33 }
  0xb7   : > { %628 = vmatpush.msra.mxu1 %v573_v32  ;;  %v520_v31 = vld [vmem:[#allocation2 + $0x1a0] sm:$0xff] }
  0xb9   : > { %293 = vadd.xlane.f32.xlu0 %v292_v34  ;;  %v574_v34 = vld [vmem:[#allocation2 + $0x348] sm:$0xff]  ;;  %629 = vmatpush.msra.mxu1 %v571_v37  ;;  %v486_v37 = vld [vmem:[#allocation2 + $0x90] sm:$0xff] }
  0xba   : > { %668 = vmatpush.msra.mxu3 %v574_v34  ;;  %v489_v34 = vld [vmem:[#allocation2 + $0xa8] sm:$0xff] }
  0xbb   : > { %630 = vmatpush.msra.mxu1 %v569_v42  ;;  %v484_v42 = vld [vmem:[#allocation2 + $0x80] sm:$0xff] }
  0xbc   : > { %669 = vmatpush.msra.mxu3 %v572_v40  ;;  %v519_v40 = vld [vmem:[#allocation2 + $0x198] sm:$0xff] }
  0xbd   : > { %330 = vadd.xlane.f32.xlu2 %v329_v36  ;;  %v539_v36 = vld [vmem:[#allocation2 + $0x230] sm:$0xff]  ;;  %631 = vmatpush.msra.mxu1 %v567_v46  ;;  %v485_v46 = vld [vmem:[#allocation2 + $0x88] sm:$0xff] }
  0xbe   : > { %609 = vmatpush.msra.mxu0 %v539_v36  ;;  %670 = vmatpush.msra.mxu3 %v570_v44 }
  0xbf   : > { %632 = vmatpush.msra.mxu1 %v565_v53  ;;  %v480_v53 = vld [vmem:[#allocation2 + $0x60] sm:$0xff] }
  0xc0   : > { %610 = vmatpush.msra.mxu0 %v537_v41  ;;  %671 = vmatpush.msra.mxu3 %v568_v50  ;;  %v483_v50 = vld [vmem:[#allocation2 + $0x78] sm:$0xff] }
  0xc1   : > { %333 = vadd.xlane.f32.xlu0 %v332_v38  ;;  %v540_v38 = vld [vmem:[#allocation2 + $0x238] sm:$0xff]  ;;  %697 = vmatpush.msrb.mxu1 %v530_v57 }
  0xc2   : > { %649 = vmatpush.msra.mxu2 %v540_v38  ;;  %611 = vmatpush.msra.mxu0 %v535_v45  ;;  %v518_v38 = vld [vmem:[#allocation2 + $0x190] sm:$0xff] }
  0xc3   : > { %672 = vmatpush.msra.mxu3 %v566_v55  ;;  %698 = vmatpush.msrb.mxu1 %v528_v7  ;;  %v479_v7 = vld [vmem:[#allocation2 + $0x58] sm:$0xff] }
  0xc4   : > { %650 = vmatpush.msra.mxu2 %v538_v43  ;;  %612 = vmatpush.msra.mxu0 %v533_v52  ;;  %v516_v43 = vld [vmem:[#allocation2 + $0x180] sm:$0xff] }
  0xc5   : > { %737 = vmatpush.msrb.mxu3 %v531_v61  ;;  %699 = vmatpush.msrb.mxu1 %v526_v14  ;;  %v478_v61 = vld [vmem:[#allocation2 + $0x50] sm:$0xff] }
  0xc6   : > { %651 = vmatpush.msra.mxu2 %v536_v47  ;;  %677 = vmatpush.msrb.mxu0 %v498_v56  ;;  %v517_v47 = vld [vmem:[#allocation2 + $0x188] sm:$0xff] }
  0xc7   : > { %738 = vmatpush.msrb.mxu3 %v529_v11  ;;  %700 = vmatpush.msrb.mxu1 %v524_v19  ;;  %v509_v19 = vld [vmem:[#allocation2 + $0x148] sm:$0xff] }
  0xc8   : > { %652 = vmatpush.msra.mxu2 %v534_v54  ;;  %678 = vmatpush.msrb.mxu0 %v496_v62  ;;  %v512_v54 = vld [vmem:[#allocation2 + $0x160] sm:$0xff]  ;;  %v510_v62 = vld [vmem:[#allocation2 + $0x150] sm:$0xff] }
  0xc9   : > { %739 = vmatpush.msrb.mxu3 %v527_v16  ;;  %701 = vmatpush.msrb.mxu1 %v522_v25 }
  0xca   : > { %717 = vmatpush.msrb.mxu2 %v499_v60  ;;  %679 = vmatpush.msrb.mxu0 %v494_v13  ;;  %v508_v13 = vld [vmem:[#allocation2 + $0x140] sm:$0xff] }
  0xcb   : > { %740 = vmatpush.msrb.mxu3 %v525_v22  ;;  %702 = vmatpush.msrb.mxu1 %v520_v31  ;;  %v475_v31 = vld [vmem:[#allocation2 + $0x38] sm:$0xff] }
  0xcc   : > { %718 = vmatpush.msrb.mxu2 %v497_v8  ;;  %v511_v8 = vld [vmem:[#allocation2 + $0x158] sm:$0xff] }
  0xcd   : > { %741 = vmatpush.msrb.mxu3 %v523_v27  ;;  %703 = vmatpush.msrb.mxu1 %v518_v38  ;;  %v506_v27 = vld [vmem:[#allocation2 + $0x130] sm:$0xff] }
  0xce   : > { %719 = vmatpush.msrb.mxu2 %v495_v15 }
  0xcf   : > { %704 = vmatpush.msrb.mxu1 %v516_v43 }
  0xd0   : > { %720 = vmatpush.msrb.mxu2 %v493_v21 }
  0xd2   : > { %721 = vmatpush.msrb.mxu2 %v491_v26  ;;  %v474_v26 = vld [vmem:[#allocation2 + $0x30] sm:$0xff] }
  0xd4   : > { %722 = vmatpush.msrb.mxu2 %v489_v34 }
 0x120   : > { %v291_v18 = vpop.xlane.xlu2 %290  ;;  %v1115_v23 = vpop.xlane.xlu1 %296 }
 0x124   : > { %v325_v28 = vpop.xlane.xlu0 %324 }
 0x125   : > { %v335_v30 = vadd.f32 %v325_v28, %v291_v18  ;;  %v492_v18 = vld [vmem:[#allocation2 + $0xc0] sm:$0xff] }
 0x126   : > { %680 = vmatpush.msrb.mxu0 %v492_v18  ;;  %v477_v18 = vld [vmem:[#allocation2 + $0x48] sm:$0xff] }
 0x127   : > { %v891_v35 = vmul.f32 -1.442695, %v335_v30  ;;  %v488_v30 = vld [vmem:[#allocation2 + $0xa0] sm:$0xff] }
 0x128   : > { %v1117_v39 = vpop.xlane.xlu2 %299  ;;  %v328_v48 = vpop.xlane.xlu1 %327  ;;  %681 = vmatpush.msrb.mxu0 %v490_v24 }
 0x129   : > { %926 = vpow2.f32 %v891_v35  ;;  %v521_v35 = vld [vmem:[#allocation2 + $0x1a8] sm:$0xff] }
 0x12a   : > { %682 = vmatpush.msrb.mxu0 %v488_v30  ;;  %742 = vmatpush.msrb.mxu3 %v521_v35 }
 0x12c   : > { %v294_v49 = vpop.xlane.xlu0 %293  ;;  %683 = vmatpush.msrb.mxu0 %v486_v37  ;;  %743 = vmatpush.msrb.mxu3 %v519_v40  ;;  %v473_v40 = vld [vmem:[#allocation2 + $0x28] sm:$0xff] }
 0x12d   : > { %v336_v51 = vadd.f32 %v328_v48, %v294_v49  ;;  %v482_v48 = vld [vmem:[#allocation2 + $0x70] sm:$0xff] }
 0x12e   : > { %v514_v49 = vld [vmem:[#allocation2 + $0x170] sm:$0xff]  ;;  %684 = vmatpush.msrb.mxu0 %v484_v42  ;;  %744 = vmatpush.msrb.mxu3 %v517_v47 }
 0x12f   : > { %v927_v58 = vpop.eup %926  ;;  %v892_v59 = vmul.f32 -1.442695, %v336_v51  ;;  %v515_v51 = vld [vmem:[#allocation2 + $0x178] sm:$0xff]  ;;  %705 = vmatpush.msrb.mxu1 %v514_v49 }
 0x130   : > { %v1119_v63 = vadd.f32 1.0, %v927_v58  ;;  %v331_v3 = vpop.xlane.xlu2 %330  ;;  %685 = vmatpush.msrb.mxu0 %v482_v48  ;;  %v481_v58 = vld [vmem:[#allocation2 + $0x68] sm:$0xff]  ;;  %745 = vmatpush.msrb.mxu3 %v515_v51  ;;  %v471_v48 = vld [vmem:[#allocation2 + $0x18] sm:$0xff] }
 0x131   : > { %928 = vpow2.f32 %v892_v59  ;;  %v337_v12 = vadd.f32 %v331_v3, %v1115_v23  ;;  %v513_v59 = vld [vmem:[#allocation2 + $0x168] sm:$0xff]  ;;  %706 = vmatpush.msrb.mxu1 %v512_v54  ;;  %v503_v49 = vld [vmem:[#allocation2 + $0x118] sm:$0xff]  ;;  %v468_v54 = vld [vmem:[#allocation2] sm:$0xff] }
 0x132   : > { %930 = vrcp.f32 %v1119_v63  ;;  %v366_v3 = vand.u32 2147483648, %v1119_v63  ;;  %686 = vmatpush.msrb.mxu0 %v480_v53  ;;  %746 = vmatpush.msrb.mxu3 %v513_v59  ;;  %vm360_vm4 = vweird.f32 %v1119_v63 }
 0x133   : > { %v893_v17 = vmul.f32 -1.442695, %v337_v12  ;;  %v476_v12 = vld [vmem:[#allocation2 + $0x40] sm:$0xff]  ;;  %707 = vmatpush.msrb.mxu1 %v510_v62  ;;  %v501_v62 = vld [vmem:[#allocation2 + $0x108] sm:$0xff] }
 0x134   : > { %v334_v20 = vpop.xlane.xlu0 %333  ;;  %687 = vmatpush.msrb.mxu0 %v478_v61  ;;  %747 = vmatpush.msrb.mxu3 %v511_v8  ;;  %v367_v24 = vor.u32 1.1754944e-38, %v366_v3  ;;  %v469_v61 = vld [vmem:[#allocation2 + $0x8] sm:$0xff] }
 0x135   : > { %932 = vpow2.f32 %v893_v17  ;;  %v338_v23 = vadd.f32 %v334_v20, %v1117_v39  ;;  %v487_v39 = vld [vmem:[#allocation2 + $0x98] sm:$0xff]  ;;  %708 = vmatpush.msrb.mxu1 %v508_v13  ;;  %v998_v13 = vmov 32.0  }
 0x136   : > { %723 = vmatpush.msrb.mxu2 %v487_v39  ;;  %688 = vmatpush.msrb.mxu0 %v476_v12  ;;  %v504_v39 = vld [vmem:[#allocation2 + $0x120] sm:$0xff] }
 0x137   : > { %v929_v28 = vpop.eup %928  ;;  %v894_v29 = vmul.f32 -1.442695, %v338_v23  ;;  %v364_v23 = vand.u32 2147483647, %v1119_v63  ;;  %748 = vmatpush.msrb.mxu3 %v509_v19  ;;  %709 = vmatpush.msrb.mxu1 %v506_v27 }
 0x138   : > { %v1124_v32 = vpop.eup %930  ;;  %v1126_v33 = vadd.f32 1.0, %v929_v28  ;;  %724 = vmatpush.msrb.mxu2 %v485_v46  ;;  %689 = vmatpush.msrb.mxu0 %v474_v26  ;;  %v470_v46 = vld [vmem:[#allocation2 + $0x10] sm:$0xff] }
 0x139   : > { %v356_v36 = vmul.f32 %v1124_v32, %v1119_v63  ;;  %934 = vpow2.f32 %v894_v29  ;;  %vm361_vm2 = vweird.f32 %v1124_v32  ;;  %v507_v63 = vld [vmem:[#allocation2 + $0x138] sm:$0xff]  ;;  %vm365_vm10 = vcmp.eq.f32.partialorder %v364_v23, 8.507059e+37  ;;  %710 = vmatpush.msrb.mxu1 %v504_v39 }
 0x13a   : > { %936 = vrcp.f32 %v1126_v33  ;;  %725 = vmatpush.msrb.mxu2 %v483_v50  ;;  %v379_v16 = vand.u32 2147483647, %v1126_v33  ;;  %v381_v17 = vand.u32 2147483648, %v1126_v33  ;;  %vm1153_vm5 = vmor %vm360_vm4, %vm361_vm2  ;;  %vm375_vm6 = vweird.f32 %v1126_v33  ;;  %749 = vmatpush.msrb.mxu3 %v507_v63 }
 0x13b   : > { %v933_v41 = vpop.eup %932  ;;  %v357_v44 = vsub.f32 1.0, %v356_v36 }
 0x13c   : > { %v1131_v45 = vadd.f32 1.0, %v933_v41  ;;  %726 = vmatpush.msrb.mxu2 %v481_v58  ;;  %vm1172_vm8 = vcmp.eq.f32.partialorder %v379_v16, 8.507059e+37  ;;  %v382_v36 = vor.u32 1.1754944e-38, %v381_v17  ;;  %v505_v41 = vld [vmem:[#allocation2 + $0x128] sm:$0xff] }
 0x13d   : > { %v358_v56 = vmul.f32 %v1124_v32, %v357_v44  ;;  %750 = vmatpush.msrb.mxu3 %v505_v41 }
 0x13e   : > { %938 = vrcp.f32 %v1131_v45  ;;  %727 = vmatpush.msrb.mxu2 %v479_v7  ;;  %v394_v30 = vand.u32 2147483647, %v1131_v45  ;;  %v396_v37 = vand.u32 2147483648, %v1131_v45  ;;  %vm390_vm11 = vweird.f32 %v1131_v45 }
 0x13f   : > { %v935_v52 = vpop.eup %934  ;;  %v359_v15 = vadd.f32 %v1124_v32, %v358_v56  ;;  %751 = vmatpush.msrb.mxu3 %v503_v49 }
 0x140   : > { %v1134_v55 = vpop.eup %936  ;;  %v1137_v57 = vadd.f32 1.0, %v935_v52  ;;  %728 = vmatpush.msrb.mxu2 %v477_v18  ;;  %vm1191_vm12 = vcmp.eq.f32.partialorder %v394_v30, 8.507059e+37  ;;  %v397_v56 = vor.u32 1.1754944e-38, %v396_v37 }
 0x141   : > { %v371_v60 = vmul.f32 %v1134_v55, %v1126_v33  ;;  %vm376_vm3 = vweird.f32 %v1134_v55  ;;  %v472_v33 = vld [vmem:[#allocation2 + $0x20] sm:$0xff]  ;;  %v363_v38 = vsel %vm1153_vm5, %v1124_v32, %v359_v15  ;;  %v502_v32 = vld [vmem:[#allocation2 + $0x110] sm:$0xff]  ;;  %752 = vmatpush.msrb.mxu3 %v501_v62 }
 0x142   : > { %940 = vrcp.f32 %v1137_v57  ;;  %vm1164_vm7 = vmor %vm375_vm6, %vm376_vm3  ;;  %729 = vmatpush.msrb.mxu2 %v475_v31  ;;  %690 = vmatpush.msrb.mxu0 %v472_v33  ;;  %v368_v53 = vsel %vm365_vm10, %v367_v24, %v363_v38  ;;  %v409_v58 = vand.u32 2147483647, %v1137_v57  ;;  %v411_v59 = vand.u32 2147483648, %v1137_v57 }
 0x143   : > { %v372_v11 = vsub.f32 1.0, %v371_v60  ;;  %711 = vmatpush.msrb.mxu1 %v502_v32  ;;  %v1220_v12 = vmul.f32 %v368_v53, %v1051_v4  ;;  %942 = vrcp.f32 %v998_v13  ;;  %vm405_vm15 = vweird.f32 %v1137_v57 }
 0x144   : > { %v1145_v14 = vpop.eup %938  ;;  %730 = vmatpush.msrb.mxu2 %v473_v40  ;;  %691 = vmatpush.msrb.mxu0 %v470_v46  ;;  %vm410_vm1 = vcmp.eq.f32.partialorder %v409_v58, 8.507059e+37 }
 0x145   : > { %v373_v21 = vmul.f32 %v1134_v55, %v372_v11  ;;  %v386_v22 = vmul.f32 %v1145_v14, %v1131_v45  ;;  %vm391_vm9 = vweird.f32 %v1145_v14  ;;  %v1217_v11 = vmul.f32 %v368_v53, %v1047_v2 }
 0x146   : > { %vm1197_vm13 = vmor %vm390_vm11, %vm391_vm9  ;;  %731 = vmatpush.msrb.mxu2 %v471_v48  ;;  %692 = vmatpush.msrb.mxu0 %v468_v54  ;;  %v412_v2 = vor.u32 1.1754944e-38, %v411_v59 }
 0x147   : > { %v374_v28 = vadd.f32 %v1134_v55, %v373_v21  ;;  %v387_v29 = vsub.f32 1.0, %v386_v22 }
 0x148   : > { %v1170_v34 = vpop.eup %940  ;;  %732 = vmatpush.msrb.mxu2 %v469_v61 }
 0x149   : > { %v388_v42 = vmul.f32 %v1145_v14, %v387_v29  ;;  %v401_v43 = vmul.f32 %v1170_v34, %v1137_v57  ;;  %v378_v44 = vsel %vm1164_vm7, %v1134_v55, %v374_v28  ;;  %v500_v55 = vld [vmem:[#allocation2 + $0x100] sm:$0xff]  ;;  %vm406_vm14 = vweird.f32 %v1170_v34  ;;  %v943_v20 = vpop.eup %942 }
 0x14a   : > { %v383_v47 = vsel %vm1172_vm8, %v382_v36, %v378_v44  ;;  %712 = vmatpush.msrb.mxu1 %v500_v55  ;;  %vm407_vm0 = vmor %vm405_vm15, %vm406_vm14  ;;  %v442_v29 = vmul.f32 32.0, %v943_v20  ;;  %vm446_vm2 = vweird.f32 %v943_v20 }
 0x14b   : > { %v389_v50 = vadd.f32 %v1145_v14, %v388_v42  ;;  %v402_v52 = vsub.f32 1.0, %v401_v43  ;;  %v1204_v60 = vmul.f32 %v383_v47, %v1053_v5  ;;  %v1212_v8 = vmul.f32 %v383_v47, %v1055_v6 }
 0x14c   : > { %v443_v38 = vsub.f32 1.0, %v442_v29 }
 0x14d   : > { %v403_v3 = vmul.f32 %v1170_v34, %v402_v52  ;;  %v393_v7 = vsel %vm1197_vm13, %v1145_v14, %v389_v50  ;;  %v423_v16 = vadd.f32 %v1204_v60, %v1217_v11  ;;  %v432_v57 = vadd.f32 %v1212_v8, %v1220_v12 }
 0x14e   : > { %v398_v5 = vsel %vm1191_vm12, %v397_v56, %v393_v7  ;;  %v444_v46 = vmul.f32 %v943_v20, %v443_v38 }
 0x14f   : > { %v404_v14 = vadd.f32 %v1170_v34, %v403_v3  ;;  %v1225_v6 = vmul.f32 %v398_v5, %v1043_v0  ;;  %v1228_v15 = vmul.f32 %v398_v5, %v1045_v1 }
 0x150   : > { %v445_v52 = vadd.f32 %v943_v20, %v444_v46 }
 0x151   : > { %v408_v4 = vsel %vm407_vm0, %v1170_v34, %v404_v14  ;;  %v424_v18 = vadd.f32 %v423_v16, %v1225_v6  ;;  %v433_v19 = vadd.f32 %v432_v57, %v1228_v15  ;;  %v450_v21 = vmax.f32 %v1217_v11, %v1225_v6 }
 0x152   : > { %v413_v0 = vsel %vm410_vm1, %v412_v2, %v408_v4  ;;  %v459_v22 = vmax.f32 %v1220_v12, %v1228_v15  ;;  %v447_v55 = vsel %vm446_vm2, %v943_v20, %v445_v52 }
 0x153   : > { %v1238_v17 = vmul.f32 %v413_v0, %v1061_v9  ;;  %v1241_v1 = vmul.f32 %v413_v0, %v1063_v10 }
 0x155   : > { %v451_v23 = vmax.f32 %v1204_v60, %v1238_v17  ;;  %v460_v9 = vmax.f32 %v1212_v8, %v1241_v1  ;;  %v425_v10 = vadd.f32 %v424_v18, %v1238_v17  ;;  %v434_v24 = vadd.f32 %v433_v19, %v1241_v1 }
 0x157   : > { %v452_v25 = vmax.f32 %v450_v21, %v451_v23  ;;  %v461_v26 = vmax.f32 %v459_v22, %v460_v9  ;;  %v426_v27 = vrot.slane %v425_v10, 4  ;;  %v435_v28 = vrot.slane %v434_v24, 4 }
 0x159   : > { %v453_v30 = vrot.slane %v452_v25, 4  ;;  %v462_v31 = vrot.slane %v461_v26, 4  ;;  %v427_v63 = vadd.f32 %v426_v27, %v425_v10  ;;  %v436_v33 = vadd.f32 %v435_v28, %v434_v24 }
 0x15b   : > { %v454_v34 = vmax.f32 %v452_v25, %v453_v30  ;;  %v463_v35 = vmax.f32 %v461_v26, %v462_v31  ;;  %v428_v36 = vrot.slane %v427_v63, 2  ;;  %v437_v37 = vrot.slane %v436_v33, 2 }
 0x15d   : > { %v455_v39 = vrot.slane %v454_v34, 2  ;;  %v464_v40 = vrot.slane %v463_v35, 2  ;;  %v429_v43 = vadd.f32 %v428_v36, %v427_v63  ;;  %v438_v44 = vadd.f32 %v437_v37, %v436_v33 }
 0x15f   : > { %v456_v41 = vmax.f32 %v454_v34, %v455_v39  ;;  %v465_v42 = vmax.f32 %v463_v35, %v464_v40  ;;  %v430_v50 = vrot.slane %v429_v43, 1  ;;  %v439_v51 = vrot.slane %v438_v44, 1 }
 0x161   : > { %v457_v32 = vrot.slane %v456_v41, 1  ;;  %v466_v47 = vrot.slane %v465_v42, 1  ;;  %v431_v53 = vadd.f32 %v430_v50, %v429_v43  ;;  %v440_v54 = vadd.f32 %v439_v51, %v438_v44 }
 0x163   : > { %v458_v48 = vmax.f32 %v456_v41, %v457_v32  ;;  %v467_v49 = vmax.f32 %v465_v42, %v466_v47  ;;  %v448_v45 = vmul.f32 %v447_v55, %v431_v53  ;;  %v449_v56 = vmul.f32 %v447_v55, %v440_v54 }
 0x165   : > { %613 = vmatmul.f32.vlgmr.msra.gmra.mxu0 %v458_v48  ;;  %633 = vmatmul.f32.vlgmr.msra.gmra.mxu1 %v467_v49 }
 0x166   : > { %653 = vmatmul.f32.vlgmr.msra.gmra.mxu2 %v458_v48  ;;  %673 = vmatmul.f32.vlgmr.msra.gmra.mxu3 %v467_v49 }
 0x16d   : > { %693 = vmatmul.f32.vlgmr.msrb.gmra.mxu0 %v448_v45  ;;  %713 = vmatmul.f32.vlgmr.msrb.gmra.mxu1 %v449_v56 }
 0x16e   : > { %733 = vmatmul.f32.vlgmr.msrb.gmra.mxu2 %v448_v45  ;;  %753 = vmatmul.f32.vlgmr.msrb.gmra.mxu3 %v449_v56 }
 0x1e2   : > { %v614_v58 = vpop.f32.mrf.mxu0  ;;  %v634_v59 = vpop.f32.mrf.mxu1 }
 0x1e3   : > { %v635_v61 = vadd.f32 %v634_v59, %v614_v58 }
 0x1e9   : > { %v654_v62 = vpop.f32.mrf.mxu2  ;;  %v674_v3 = vpop.f32.mrf.mxu3 }
 0x1ea   : > { %v694_v7 = vpop.f32.mrf.mxu0  ;;  %v714_v13 = vpop.f32.mrf.mxu1  ;;  %v675_v4 = vadd.f32 %v674_v3, %v654_v62 }
 0x1eb   : > { %v695_v5 = vadd.f32 %v694_v7, %v635_v61 }
 0x1ed   : > { %v715_v14 = vadd.f32 %v714_v13, %v695_v5 }
 0x1ef   : > { %v895_v2 = vmul.f32 -1.442695, %v715_v14 }
 0x1f1   : > { %944 = vpow2.f32 %v895_v2  ;;  %v734_v16 = vpop.f32.mrf.mxu2  ;;  %v754_v0 = vpop.f32.mrf.mxu3 }
 0x1f2   : > { %v735_v57 = vadd.f32 %v734_v16, %v675_v4 }
 0x1f4   : > { %v755_v18 = vadd.f32 %v754_v0, %v735_v57 }
 0x1f6   : > { %v896_v19 = vmul.f32 -1.442695, %v755_v18 }
 0x1f7   : > { %v945_v20 = vpop.eup %944 }
 0x1f8   : > { %v763_v21 = vadd.f32 1.0, %v945_v20  ;;  %946 = vpow2.f32 %v896_v19 }
 0x1fa   : > { %948 = vrcp.f32 %v763_v21  ;;  %v776_v25 = vand.u32 2147483648, %v763_v21  ;;  %v774_v27 = vand.u32 2147483647, %v763_v21  ;;  %vm770_vm4 = vweird.f32 %v763_v21 }
 0x1fc   : > { %v777_v30 = vor.u32 1.1754944e-38, %v776_v25  ;;  %vm775_vm6 = vcmp.eq.f32.partialorder %v774_v27, 8.507059e+37 }
 0x1fe   : > { %v947_v22 = vpop.eup %946 }
 0x1ff   : > { %v764_v23 = vadd.f32 1.0, %v947_v22 }
 0x200   : > { %v949_v9 = vpop.eup %948 }
 0x201   : > { %v766_v10 = vmul.f32 %v949_v9, %v763_v21  ;;  %950 = vrcp.f32 %v764_v23  ;;  %vm771_vm3 = vweird.f32 %v949_v9  ;;  %v791_v36 = vand.u32 2147483648, %v764_v23 }
 0x202   : > { %vm772_vm5 = vmor %vm770_vm4, %vm771_vm3  ;;  %v789_v38 = vand.u32 2147483647, %v764_v23  ;;  %vm785_vm8 = vweird.f32 %v764_v23 }
 0x203   : > { %v767_v24 = vsub.f32 1.0, %v766_v10  ;;  %v792_v44 = vor.u32 1.1754944e-38, %v791_v36 }
 0x204   : > { %vm790_vm10 = vcmp.eq.f32.partialorder %v789_v38, 8.507059e+37 }
 0x205   : > { %v768_v26 = vmul.f32 %v949_v9, %v767_v24 }
 0x207   : > { %v951_v28 = vpop.eup %950  ;;  %v769_v29 = vadd.f32 %v949_v9, %v768_v26 }
 0x208   : > { %v781_v31 = vmul.f32 %v951_v28, %v764_v23  ;;  %vm786_vm7 = vweird.f32 %v951_v28 }
 0x209   : > { %v773_v63 = vsel %vm772_vm5, %v949_v9, %v769_v29  ;;  %vm787_vm9 = vmor %vm785_vm8, %vm786_vm7 }
 0x20a   : > { %v778_v33 = vsel %vm775_vm6, %v777_v30, %v773_v63  ;;  %v782_v34 = vsub.f32 1.0, %v781_v31 }
 0x20b   : > { %v795_v35 = vperm.slane %v778_v33, 0 }
 0x20c   : > { %v783_v37 = vmul.f32 %v951_v28, %v782_v34 }
 0x20d   : > { %v797_v39 = vmul.f32 %v795_v35, %v1217_v11  ;;  %v799_v40 = vmul.f32 %v795_v35, %v1204_v60  ;;  %v801_v41 = vmul.f32 %v795_v35, %v1225_v6  ;;  %v803_v42 = vmul.f32 %v795_v35, %v1238_v17 }
 0x20e   : > { %v784_v43 = vadd.f32 %v951_v28, %v783_v37 }
 0x20f   : > { %805 = vst [vmem:[%s214_s22] sm:$0xff] %v797_v39 }
 0x210   : > { %807 = vst [vmem:[%s214_s22 + $0x10] sm:$0xff] %v799_v40  ;;  %v788_v46 = vsel %vm787_vm9, %v951_v28, %v784_v43 }
 0x211   : > { %809 = vst [vmem:[%s214_s22 + $0x20] sm:$0xff] %v801_v41  ;;  %v793_v32 = vsel %vm790_vm10, %v792_v44, %v788_v46 }
 0x212   : > { %811 = vst [vmem:[%s214_s22 + $0x30] sm:$0xff] %v803_v42  ;;  %v796_v47 = vperm.slane %v793_v32, 0 }
 0x214   : > { %v798_v11 = vmul.f32 %v796_v47, %v1220_v12  ;;  %v800_v60 = vmul.f32 %v796_v47, %v1212_v8  ;;  %v802_v6 = vmul.f32 %v796_v47, %v1228_v15  ;;  %v804_v17 = vmul.f32 %v796_v47, %v1241_v1 }
 0x216   : > { %806 = vst [vmem:[%s214_s22 + $0x8] sm:$0xff] %v798_v11 }
 0x217   : > { %808 = vst [vmem:[%s214_s22 + $0x18] sm:$0xff] %v800_v60 }
 0x218   : > { %810 = vst [vmem:[%s214_s22 + $0x28] sm:$0xff] %v802_v6 }
 0x219   : > { %812 = vst [vmem:[%s214_s22 + $0x38] sm:$0xff] %v804_v17 }
 0x21a PF: > { %s15_s15 = sadd.s32 1, %s992_s15  }
 0x21b   : > { %p12_p7 = scmp.ge.s32.totalorder %s15_s15, 4  }
 0x21d   :  { %14 = sbr.rel (!%p12_p7) target bundleno = 1 (0x1), region = 72 }
 0x222   :  { %834 = vsyncpa [#allocation3], 1 }
 0x223   :  { %836 = vsyncpa [#allocation3 + $0x1], 1 }

</bundles_post_ra>
